<compile_context>
chip_gen: v6e
topology: v6e:2x2x1
jax: 0.10.0
libtpu: 0.0.40
codegen_flags: <defaults>
</compile_context>

<pallas_src>
import functools

import jax
import jax.numpy as jnp
from jax import lax
from jax.experimental import pallas as pl
from jax.experimental.pallas import tpu as pltpu

EPS = 1e-5  # nn.InstanceNorm2d default


# --------------------------------------------------------------------------- #
# Kernels
# --------------------------------------------------------------------------- #
def _adain_rows_kernel(x_ref, gb_ref, o_ref, *, hw_true):
    """Row-tiled kernel: full spatial extent per block, single-pass stats.

    x_ref: (TR, HW)   gb_ref: (2, TR, 1)  [0]=gamma, [1]=beta   o_ref: (TR, HW)
    """
    xf = x_ref[...].astype(jnp.float32)
    inv_n = jnp.float32(1.0 / hw_true)

    row_sum = jnp.sum(xf, axis=1, keepdims=True)             # (TR, 1)
    row_ssq = jnp.sum(xf * xf, axis=1, keepdims=True)        # (TR, 1)
    mean = row_sum * inv_n
    var = jnp.maximum(row_ssq * inv_n - mean * mean, 0.0)    # guard cancellation

    gamma = gb_ref[0]                                        # (TR, 1)
    beta = gb_ref[1]                                         # (TR, 1)
    scale = (1.0 + gamma) * lax.rsqrt(var + EPS)
    shift = beta - mean * scale
    o_ref[...] = (xf * scale + shift).astype(o_ref.dtype)


def _adain_spatial_kernel(x_ref, gb_ref, o_ref, sum_ref, ssq_ref, *,
                          hw_true, hw_tile):
    """Spatial-tiled two-pass fallback for very large H*W.

    grid = (rows_blocks, 2, hw_blocks); pass 0 accumulates sum / sum-of-squares
    into VMEM scratch, pass 1 applies the fused scale/shift and writes output.
    """
    p = pl.program_id(1)   # 0 = stats pass, 1 = apply pass
    h = pl.program_id(2)

    @pl.when((p == 0) & (h == 0))
    def _init():
        sum_ref[...] = jnp.zeros_like(sum_ref)
        ssq_ref[...] = jnp.zeros_like(ssq_ref)

    xf = x_ref[...].astype(jnp.float32)                       # (TR, TH)

    @pl.when(p == 0)
    def _accumulate():
        if hw_true % hw_tile != 0:   # static: only emitted for ragged tails
            col = lax.broadcasted_iota(jnp.int32, xf.shape, 1)
            xv = jnp.where(col < hw_true - h * hw_tile, xf, 0.0)
        else:
            xv = xf
        sum_ref[...] += jnp.sum(xv, axis=1, keepdims=True)
        ssq_ref[...] += jnp.sum(xv * xv, axis=1, keepdims=True)

    @pl.when(p == 1)
    def _apply():
        inv_n = jnp.float32(1.0 / hw_true)
        mean = sum_ref[...] * inv_n
        var = jnp.maximum(ssq_ref[...] * inv_n - mean * mean, 0.0)
        scale = (1.0 + gb_ref[0]) * lax.rsqrt(var + EPS)
        shift = gb_ref[1] - mean * scale
        o_ref[...] = (xf * scale + shift).astype(o_ref.dtype)


# --------------------------------------------------------------------------- #
# Wrapper
# --------------------------------------------------------------------------- #
def _vmem_capacity_bytes():
    try:
        info = pltpu.get_tpu_info()
        cap = getattr(info, "vmem_capacity_bytes", None)
        if cap:
            return int(cap)
    except Exception:
        pass
    return 64 * 1024 * 1024   # conservative default (v7x per-TC VMEM)


def adain_pallas(x, s, wg, bg, wb, bb, *, footprint_budget=None):
    B, C, H, W = x.shape
    rows = B * C
    hw = H * W
    itemsize = jnp.dtype(x.dtype).itemsize

    # Style affine params: one small batched matmul in XLA, computed once.
    sf = s.astype(jnp.float32)
    gamma = sf @ wg.astype(jnp.float32).T + bg.astype(jnp.float32)   # (B, C)
    beta = sf @ wb.astype(jnp.float32).T + bb.astype(jnp.float32)    # (B, C)
    gb = jnp.stack([gamma, beta], axis=0).reshape(2, rows, 1)        # packed

    x_flat = x.reshape(rows, hw)        # contiguous merge: no extra HBM pass

    # --- per-generation VMEM accounting -------------------------------------
    vmem_cap = _vmem_capacity_bytes()
    vmem_limit = int(min(vmem_cap * 3 // 4, 100 * 1024 * 1024))
    budget = footprint_budget if footprint_budget is not None else vmem_limit * 3 // 4

    # Honest per-element footprint: 2x double-buffered in + 2x double-buffered
    # out + ~2 full f32 compute temporaries.
    bytes_per_elem = 4 * itemsize + 8
    bytes_per_row = hw * bytes_per_elem
    fit_rows = budget // bytes_per_row

    if fit_rows >= rows:
        tr = rows
        if rows >= 16:   # keep >= 2 blocks for megacore sharding / pipelining
            tr = ((-(-rows // 2)) + 7) // 8 * 8
    elif fit_rows >= 8:
        tr = int(fit_rows) // 8 * 8
    else:
        tr = None        # even an 8-row block of full hw does not fit

    if tr is not None:
        # ---------------- main path: row-tiled, single pass ----------------
        grid = (pl.cdiv(rows, tr),)
        cost = pl.CostEstimate(
            flops=8 * rows * hw,
            transcendentals=rows,
            bytes_accessed=2 * rows * hw * itemsize + 2 * rows * 4,
        )
        out = pl.pallas_call(
            functools.partial(_adain_rows_kernel, hw_true=hw),
            out_shape=jax.ShapeDtypeStruct((rows, hw), x.dtype),
            grid_spec=pltpu.PrefetchScalarGridSpec(
                num_scalar_prefetch=0,
                grid=grid,
                in_specs=[
                    pl.BlockSpec((tr, hw), lambda r: (r, 0)),        # x rows
                    pl.BlockSpec((2, tr, 1), lambda r: (0, r, 0)),   # gamma+beta
                ],
                out_specs=pl.BlockSpec((tr, hw), lambda r: (r, 0)),
            ),
            compiler_params=pltpu.CompilerParams(
                dimension_semantics=("parallel",),
                vmem_limit_bytes=vmem_limit,
            ),
            cost_estimate=cost,
        )(x_flat, gb)
    else:
        # -------------- fallback: spatial-tiled two-pass --------------------
        tr = rows if rows < 8 else 8
        bytes_per_col = tr * bytes_per_elem
        th = int(budget // bytes_per_col) // 128 * 128
        th = max(128, min(th, (hw + 127) // 128 * 128))
        grid = (pl.cdiv(rows, tr), 2, pl.cdiv(hw, th))
        cost = pl.CostEstimate(
            flops=10 * rows * hw,
            transcendentals=rows,
            bytes_accessed=3 * rows * hw * itemsize + 2 * rows * 4,
        )
        out = pl.pallas_call(
            functools.partial(_adain_spatial_kernel, hw_true=hw, hw_tile=th),
            out_shape=jax.ShapeDtypeStruct((rows, hw), x.dtype),
            grid_spec=pltpu.PrefetchScalarGridSpec(
                num_scalar_prefetch=0,
                grid=grid,
                in_specs=[
                    pl.BlockSpec((tr, th), lambda r, p, h: (r, h)),
                    pl.BlockSpec((2, tr, 1), lambda r, p, h: (0, r, 0)),
                ],
                # Output block index stays put during the stats pass and only
                # advances during the apply pass -> each block written once.
                out_specs=pl.BlockSpec((tr, th), lambda r, p, h: (r, h * p)),
                scratch_shapes=[
                    pltpu.VMEM((tr, 1), jnp.float32),   # running sum
                    pltpu.VMEM((tr, 1), jnp.float32),   # running sum of squares
                ],
            ),
            compiler_params=pltpu.CompilerParams(
                dimension_semantics=("parallel", "arbitrary", "arbitrary"),
                vmem_limit_bytes=vmem_limit,
            ),
            cost_estimate=cost,
        )(x_flat, gb)

    return out.reshape(B, C, H, W)


# --------------------------------------------------------------------------- #
# Pure-JAX reference (matches the PyTorch forward)
# --------------------------------------------------------------------------- #
def adain_ref(x, s, wg, bg, wb, bb):
    gamma = s @ wg.T + bg            # (B, C)
    beta = s @ wb.T + bb             # (B, C)
    mean = x.mean(axis=(2, 3), keepdims=True)
    var = ((x - mean) ** 2).mean(axis=(2, 3), keepdims=True)   # biased variance
    norm = (x - mean) / jnp.sqrt(var + EPS)
    return (1.0 + gamma[:, :, None, None]) * norm + beta[:, :, None, None]


if __name__ == "__main__":
    B, C, H, W = 2, 4, 16, 16     # nf = C = 4
    SDIM = 8

    key = jax.random.PRNGKey(0)
    kx, ks, kwg, kbg, kwb, kbb, kx2 = jax.random.split(key, 7)

    x = jax.random.normal(kx, (B, C, H, W), dtype=jnp.float32)
    s = jax.random.normal(ks, (B, SDIM), dtype=jnp.float32)

    wg = jax.random.normal(kwg, (C, SDIM), dtype=jnp.float32) * 0.1
    bg = jax.random.normal(kbg, (C,), dtype=jnp.float32) * 0.1
    wb = jax.random.normal(kwb, (C, SDIM), dtype=jnp.float32) * 0.1
    bb = jax.random.normal(kbb, (C,), dtype=jnp.float32) * 0.1

    # Main path (row-tiled, single-pass stats).
    out = jax.block_until_ready(adain_pallas(x, s, wg, bg, wb, bb))
    ref = adain_ref(x, s, wg, bg, wb, bb)
    assert out.shape == (B, C, H, W)
    assert jnp.allclose(out, ref, atol=1e-4, rtol=1e-4), "main path mismatch"

    # Main path with a ragged spatial extent (H*W not a multiple of 128):
    # no host-side pad/slice, full-extent last-dim block.
    x2 = jax.random.normal(kx2, (B, C, 20, 20), dtype=jnp.float32)
    ref2 = adain_ref(x2, s, wg, bg, wb, bb)
    out2 = jax.block_until_ready(adain_pallas(x2, s, wg, bg, wb, bb))
    assert jnp.allclose(out2, ref2, atol=1e-4, rtol=1e-4), "ragged-hw mismatch"

    # Spatial-tiled two-pass fallback, forced via a tiny footprint budget
    # (exercises the large-H*W path incl. ragged hw-tile masking).
    out3 = jax.block_until_ready(
        adain_pallas(x2, s, wg, bg, wb, bb, footprint_budget=64 * 1024))
    assert jnp.allclose(out3, ref2, atol=1e-4, rtol=1e-4), "fallback mismatch"

    print("KERNEL_OK")
</pallas_src>

<mosaic_0001>
module attributes {stable_mosaic.version = 11 : i64} {
  func.func @_adain_rows_kernel(%arg0: i32, %arg1: memref<8x256xf32, #tpu.memory_space<vmem>>, %arg2: memref<2x8x1xf32, #tpu.memory_space<vmem>>, %arg3: memref<8x256xf32, #tpu.memory_space<vmem>>) attributes {dimension_semantics = [#tpu.dimension_semantics<parallel>], iteration_bounds = array<i64: 1>, scalar_prefetch = 0 : i64, scratch_operands = 0 : i64, tpu.core_type = #tpu.core_type<tc>, window_params = [{transform_indices = @transform_0, window_bounds = array<i64: 8, 256>}, {transform_indices = @transform_1, window_bounds = array<i64: 2, 8, 1>}, {transform_indices = @transform_2, window_bounds = array<i64: 8, 256>}]} {
    %c0 = arith.constant 0 : index
    %c0_0 = arith.constant 0 : index
    %0 = vector.load %arg1[%c0, %c0_0] : memref<8x256xf32, #tpu.memory_space<vmem>>, vector<8x256xf32>
    %cst = arith.constant dense<0.000000e+00> : vector<8xf32>
    %1 = vector.multi_reduction <add>, %0, %cst [1] : vector<8x256xf32> to vector<8xf32>
    %2 = vector.shape_cast %1 : vector<8xf32> to vector<8x1xf32>
    %3 = arith.mulf %0, %0 : vector<8x256xf32>
    %cst_1 = arith.constant dense<0.000000e+00> : vector<8xf32>
    %4 = vector.multi_reduction <add>, %3, %cst_1 [1] : vector<8x256xf32> to vector<8xf32>
    %5 = vector.shape_cast %4 : vector<8xf32> to vector<8x1xf32>
    %cst_2 = arith.constant 3.906250e-03 : f32
    %6 = vector.broadcast %cst_2 : f32 to vector<8x1xf32>
    %7 = arith.mulf %2, %6 : vector<8x1xf32>
    %cst_3 = arith.constant 3.906250e-03 : f32
    %8 = vector.broadcast %cst_3 : f32 to vector<8x1xf32>
    %9 = arith.mulf %5, %8 : vector<8x1xf32>
    %10 = arith.mulf %7, %7 : vector<8x1xf32>
    %11 = arith.subf %9, %10 : vector<8x1xf32>
    %cst_4 = arith.constant 0.000000e+00 : f32
    %12 = vector.broadcast %cst_4 : f32 to vector<8x1xf32>
    %13 = arith.maximumf %11, %12 : vector<8x1xf32>
    %c0_5 = arith.constant 0 : index
    %c0_6 = arith.constant 0 : index
    %c0_7 = arith.constant 0 : index
    %14 = vector.load %arg2[%c0_5, %c0_6, %c0_7] : memref<2x8x1xf32, #tpu.memory_space<vmem>>, vector<1x8x1xf32>
    %15 = vector.shape_cast %14 : vector<1x8x1xf32> to vector<8x1xf32>
    %c1 = arith.constant 1 : index
    %c0_8 = arith.constant 0 : index
    %c0_9 = arith.constant 0 : index
    %16 = vector.load %arg2[%c1, %c0_8, %c0_9] : memref<2x8x1xf32, #tpu.memory_space<vmem>>, vector<1x8x1xf32>
    %17 = vector.shape_cast %16 : vector<1x8x1xf32> to vector<8x1xf32>
    %cst_10 = arith.constant 1.000000e+00 : f32
    %18 = vector.broadcast %cst_10 : f32 to vector<8x1xf32>
    %19 = arith.addf %18, %15 : vector<8x1xf32>
    %cst_11 = arith.constant 9.99999974E-6 : f32
    %20 = vector.broadcast %cst_11 : f32 to vector<8x1xf32>
    %21 = arith.addf %13, %20 : vector<8x1xf32>
    %22 = math.rsqrt %21 : vector<8x1xf32>
    %23 = arith.mulf %19, %22 : vector<8x1xf32>
    %24 = arith.mulf %7, %23 : vector<8x1xf32>
    %25 = arith.subf %17, %24 : vector<8x1xf32>
    %26 = vector.broadcast %23 : vector<8x1xf32> to vector<8x256xf32>
    %27 = arith.mulf %0, %26 : vector<8x256xf32>
    %28 = vector.broadcast %25 : vector<8x1xf32> to vector<8x256xf32>
    %29 = arith.addf %27, %28 : vector<8x256xf32>
    %c0_12 = arith.constant 0 : index
    %c0_13 = arith.constant 0 : index
    %30 = vector.load %arg3[%c0_12, %c0_13] : memref<8x256xf32, #tpu.memory_space<vmem>>, vector<8x256xf32>
    tpu.vector_store %arg3[%c0_12, %c0_13], %29 {strides = array<i32>} : memref<8x256xf32, #tpu.memory_space<vmem>>, vector<8x256xf32>,
    return
  }
  func.func @transform_0(%arg0: i32) -> (i32, i32) {
    %c0_i32 = arith.constant 0 : i32
    %c0_i32_0 = arith.constant 0 : i32
    return %arg0, %c0_i32 : i32, i32
  }
  func.func @transform_1(%arg0: i32) -> (i32, i32, i32) {
    %c0_i32 = arith.constant 0 : i32
    %c0_i32_0 = arith.constant 0 : i32
    %c0_i32_1 = arith.constant 0 : i32
    return %c0_i32, %arg0, %c0_i32_0 : i32, i32, i32
  }
  func.func @transform_2(%arg0: i32) -> (i32, i32) {
    %c0_i32 = arith.constant 0 : i32
    %c0_i32_0 = arith.constant 0 : i32
    return %arg0, %c0_i32 : i32, i32
  }
}

</mosaic_0001>

<bundles_post_ra>
// kernel: tpu_custom_call.1
= control target key start
LH: loop header
LB: loop body
LE: loop exit
PB: predicated region body
PF: predicated region fallthrough
CT: control target
= control target key end

     0   :  { %s127_s0 = inlined_call_operand.vmem [shape: f32[8,256], index: 0, kind: input, shape index: {}]   ;;  %s128_s1 = inlined_call_operand.vmem [shape: f32[2,8,1], index: 1, kind: input, shape index: {}]   ;;  %s129_s2 = inlined_call_operand.hbm [shape: f32[8,256], index: 2, kind: output, shape index: {}]  }
   0x1   :  { %v12_v0 = vld [vmem:[%s127_s0] sm:$0xff]  ;;  %v13_v1 = vld [vmem:[%s127_s0 + $0x8] sm:$0xff] }
   0x2   :  { %7 = vsyncpa [#allocation3], 0  ;;  %v14_v2 = vadd.f32 %v13_v1, %v12_v0  ;;  %v17_v3 = vmul.f32 %v12_v0, %v12_v0  ;;  %v18_v4 = vmul.f32 %v13_v1, %v13_v1  ;;  %v95_v6 = vmov 0   ;;  %v27_v15 = vld [vmem:[%s128_s1] sm:$0xff]  ;;  %v66_v19 = vld [vmem:[%s128_s1 + $0x8] sm:$0xff]  ;;  %s96_s16 = smov [#allocation2]  }
   0x3   :  { %69 = vset.pattern.permute.xlu1 %v95_v6  ;;  %70 = vset.pattern.permute.xlu0 %v95_v6  ;;  %v30_v16 = vadd.f32 1.0, %v27_v15  ;;  %s58_s17 = sshll.u32 %s96_s16, 4  ;;  %s59_s17 = int_to_ptr.vmem [resolvable:$true] %s58_s17 }
   0x4   :  { %15 = vadd.xlane.f32.xlu0 %v14_v2  ;;  %v19_v5 = vadd.f32 %v18_v4, %v17_v3  ;;  %s73_s18 = scalar_lea.vmem %s59_s17, 256  ;;  %p78_p1 = scmp.lt.s32.totalorder %s59_s17, %s59_s17 }
   0x5   :  { %p74_p0 = scmp.ne.s32.totalorder %s59_s17, %s73_s18  ;;  %p79_p2 = scmp.lt.s32.totalorder %s73_s18, %s73_s18 }
   0x7   :  { %p80_p3 = por %p79_p2, %p78_p1 }
   0x8   :  { %20 = vadd.xlane.f32.xlu0 %v19_v5 }
   0x9   :  { %p81_p4 = pnand %p80_p3, %p74_p0 }
  0x8d   :  { %v16_v7 = vpop.xlane.xlu0 %15 }
  0x8e   :  { %v22_v8 = vmul.f32 0.00390625, %v16_v7 }
  0x90   :  { %v24_v10 = vmul.f32 %v22_v8, %v22_v8 }
  0x91   :  { %v21_v9 = vpop.xlane.xlu0 %20 }
  0x92   :  { %v23_v11 = vmul.f32 0.00390625, %v21_v9 }
  0x94   :  { %v25_v12 = vsub.f32 %v23_v11, %v24_v10 }
  0x96   :  { %v26_v13 = vmax.f32 %v25_v12, 0.0 }
  0x98   :  { %v31_v14 = vadd.f32 1e-05, %v26_v13 }
  0x9a   :  { %71 = vrsqrt.f32 %v31_v14 }
  0xa7   :  { %v72_v17 = vpop.eup %71 }
  0xa8   :  { %v33_v18 = vmul.f32 %v72_v17, %v30_v16 }
  0xaa   :  { %38 = vperm.xlu1 %69, %v33_v18   ;;  %v34_v20 = vmul.f32 %v33_v18, %v22_v8 }
  0xac   :  { %v35_v21 = vsub.f32 %v66_v19, %v34_v20 }
  0xae   :  { %45 = vperm.xlu1 %69, %v35_v21  }
 0x125   :  { %v39_v22 = vpop.permute.xlu1 %38 }
 0x126   :  { %v41_v23 = vmul.f32 %v39_v22, %v12_v0  ;;  %v42_v24 = vmul.f32 %v39_v22, %v13_v1 }
 0x129   :  { %v46_v25 = vpop.permute.xlu1 %45 }
 0x12a   :  { %v48_v26 = vadd.f32 %v46_v25, %v41_v23  ;;  %v49_v27 = vadd.f32 %v46_v25, %v42_v24 }
 0x12c   :  { %50 = vst [vmem:[#allocation2] sm:$0xff] %v48_v26  ;;  %51 = vst [vmem:[#allocation2 + $0x8] sm:$0xff] %v49_v27 }
 0x12d   :  { %84 = shalt.err (!%p81_p4)
}
 0x12e   :  { %61 = dma.vmem_to_hbm [thread:$0]  %s59_s17, 256, %s129_s2, [#allocation3]  }
 0x12f   :  { %93 = dma.done.wait [#allocation3], 256  }
 0x130   :  { %94 = vsyncadd [#allocation3], 4294967040 }
 0x131   :  { %65 = vsyncpa [#allocation3], 1 }

</bundles_post_ra>
